<compile_context>
chip_gen: v5e
topology: v5e:2x2
jax: 0.10.0
libtpu: 0.0.40
codegen_flags: <defaults>
</compile_context>

<pallas_src>
import functools
import math

import jax
import jax.numpy as jnp
from jax.experimental import pallas as pl
from jax.experimental.pallas import tpu as pltpu


# ----------------------------------------------------------------------------
# Helpers
# ----------------------------------------------------------------------------
def _round_up(x, m):
    return ((x + m - 1) // m) * m


def _pad2(a, rows, cols):
    pr, pc = rows - a.shape[0], cols - a.shape[1]
    if pr or pc:
        a = jnp.pad(a, ((0, pr), (0, pc)))
    return a


def _choose_tiles(B, n_in, n_out, tb, tn, tk):
    # Clamp default tiles to the (aligned) problem size; keep lanes 128-dense
    # and sublanes 8-dense.  Defaults are sized to stay well inside v7x's
    # 64 MiB VMEM with double-buffered inputs.
    tb = min(tb, _round_up(B, 8))
    tn = min(tn, _round_up(n_out, 128))
    tk = min(tk, _round_up(n_in, 128))
    Bp = _round_up(B, tb)
    n_out_p = _round_up(n_out, tn)
    n_in_p = _round_up(n_in, tk)
    return tb, tn, tk, Bp, n_in_p, n_out_p


_COMPILER_PARAMS = pltpu.CompilerParams(
    dimension_semantics=("parallel", "parallel", "arbitrary"),
    vmem_limit_bytes=48 * 1024 * 1024,
)


# ----------------------------------------------------------------------------
# Kernels (weights arrive pre-transposed as [n_in, n_out])
# ----------------------------------------------------------------------------
def _train_kernel(x_ref, mu_wt_ref, logsig2_t_ref, bias_ref, eps_ref, out_ref,
                  mu_acc, var_acc, *, mxu_dtype):
    k = pl.program_id(2)

    @pl.when(k == 0)
    def _():
        mu_acc[...] = jnp.zeros_like(mu_acc)
        var_acc[...] = jnp.zeros_like(var_acc)

    x = x_ref[...].astype(jnp.float32)                       # [tb, tk]
    mu_w = mu_wt_ref[...].astype(jnp.float32)                # [tk, tn]
    s2_w = jnp.exp(logsig2_t_ref[...].astype(jnp.float32))   # EUP, f32

    mu_acc[...] += jnp.dot(x.astype(mxu_dtype), mu_w.astype(mxu_dtype),
                           preferred_element_type=jnp.float32)
    var_acc[...] += jnp.dot((x * x).astype(mxu_dtype), s2_w.astype(mxu_dtype),
                            preferred_element_type=jnp.float32)

    @pl.when(k == pl.num_programs(2) - 1)
    def _():
        bias = bias_ref[...].astype(jnp.float32)             # [1, tn]
        eps = eps_ref[...].astype(jnp.float32)               # [tb, tn]
        out = mu_acc[...] + bias + jnp.sqrt(var_acc[...] + 1e-8) * eps
        out_ref[...] = out.astype(out_ref.dtype)


def _map_kernel(x_ref, mu_wt_ref, bias_ref, out_ref, acc, *, mxu_dtype):
    k = pl.program_id(2)

    @pl.when(k == 0)
    def _():
        acc[...] = jnp.zeros_like(acc)

    acc[...] += jnp.dot(x_ref[...].astype(mxu_dtype),
                        mu_wt_ref[...].astype(mxu_dtype),
                        preferred_element_type=jnp.float32)

    @pl.when(k == pl.num_programs(2) - 1)
    def _():
        out = acc[...] + bias_ref[...].astype(jnp.float32)
        out_ref[...] = out.astype(out_ref.dtype)


def _sampled_kernel(x_ref, mu_wt_ref, logsig2_t_ref, rand_t_ref, bias_ref,
                    out_ref, acc, *, mxu_dtype):
    k = pl.program_id(2)

    @pl.when(k == 0)
    def _():
        acc[...] = jnp.zeros_like(acc)

    mu_w = mu_wt_ref[...].astype(jnp.float32)                # [tk, tn]
    sig = jnp.sqrt(jnp.exp(logsig2_t_ref[...].astype(jnp.float32)))
    w = mu_w + sig * rand_t_ref[...].astype(jnp.float32)     # fused per K-tile
    acc[...] += jnp.dot(x_ref[...].astype(mxu_dtype), w.astype(mxu_dtype),
                        preferred_element_type=jnp.float32)

    @pl.when(k == pl.num_programs(2) - 1)
    def _():
        out = acc[...] + bias_ref[...].astype(jnp.float32) + 1e-8
        out_ref[...] = out.astype(out_ref.dtype)


# ----------------------------------------------------------------------------
# Wrappers
# ----------------------------------------------------------------------------
def vblinear_train(x, mu_w, logsig2_w, bias, eps, *, mxu_dtype=jnp.float32,
                   tb=256, tn=256, tk=512):
    """Training-mode forward.  x:[B,n_in], mu_w/logsig2_w:[n_out,n_in]."""
    B, n_in = x.shape
    n_out = mu_w.shape[0]
    tb, tn, tk, Bp, n_in_p, n_out_p = _choose_tiles(B, n_in, n_out, tb, tn, tk)

    # One-time layout plumbing: pre-transpose weights to [n_in, n_out] and pad
    # everything to tile-divisible, lane-dense shapes (zero-padded n_in rows of
    # x contribute 0 to both matmuls, so padded weight columns are harmless).
    xp = _pad2(x, Bp, n_in_p)
    mu_wt = _pad2(mu_w.T, n_in_p, n_out_p)
    ls_t = _pad2(logsig2_w.T, n_in_p, n_out_p)
    bias_p = _pad2(bias.reshape(1, -1), 1, n_out_p)
    eps_p = _pad2(eps, Bp, n_out_p)

    grid = (Bp // tb, n_out_p // tn, n_in_p // tk)
    out = pl.pallas_call(
        functools.partial(_train_kernel, mxu_dtype=mxu_dtype),
        out_shape=jax.ShapeDtypeStruct((Bp, n_out_p), x.dtype),
        grid_spec=pltpu.PrefetchScalarGridSpec(
            num_scalar_prefetch=0,
            grid=grid,
            in_specs=[
                pl.BlockSpec((tb, tk), lambda i, j, k: (i, k)),   # x
                pl.BlockSpec((tk, tn), lambda i, j, k: (k, j)),   # mu_w.T
                pl.BlockSpec((tk, tn), lambda i, j, k: (k, j)),   # logsig2.T
                pl.BlockSpec((1, tn), lambda i, j, k: (0, j)),    # bias
                pl.BlockSpec((tb, tn), lambda i, j, k: (i, j)),   # eps
            ],
            out_specs=pl.BlockSpec((tb, tn), lambda i, j, k: (i, j)),
            scratch_shapes=[pltpu.VMEM((tb, tn), jnp.float32),
                            pltpu.VMEM((tb, tn), jnp.float32)],
        ),
        compiler_params=_COMPILER_PARAMS,
    )(xp, mu_wt, ls_t, bias_p, eps_p)
    return out[:B, :n_out]


def vblinear_eval_map(x, mu_w, bias, *, mxu_dtype=jnp.float32,
                      tb=256, tn=256, tk=512):
    """Eval MAP-mode forward: only x, mu_w, bias are streamed."""
    B, n_in = x.shape
    n_out = mu_w.shape[0]
    tb, tn, tk, Bp, n_in_p, n_out_p = _choose_tiles(B, n_in, n_out, tb, tn, tk)

    xp = _pad2(x, Bp, n_in_p)
    mu_wt = _pad2(mu_w.T, n_in_p, n_out_p)
    bias_p = _pad2(bias.reshape(1, -1), 1, n_out_p)

    grid = (Bp // tb, n_out_p // tn, n_in_p // tk)
    out = pl.pallas_call(
        functools.partial(_map_kernel, mxu_dtype=mxu_dtype),
        out_shape=jax.ShapeDtypeStruct((Bp, n_out_p), x.dtype),
        grid_spec=pltpu.PrefetchScalarGridSpec(
            num_scalar_prefetch=0,
            grid=grid,
            in_specs=[
                pl.BlockSpec((tb, tk), lambda i, j, k: (i, k)),   # x
                pl.BlockSpec((tk, tn), lambda i, j, k: (k, j)),   # mu_w.T
                pl.BlockSpec((1, tn), lambda i, j, k: (0, j)),    # bias
            ],
            out_specs=pl.BlockSpec((tb, tn), lambda i, j, k: (i, j)),
            scratch_shapes=[pltpu.VMEM((tb, tn), jnp.float32)],
        ),
        compiler_params=_COMPILER_PARAMS,
    )(xp, mu_wt, bias_p)
    return out[:B, :n_out]


def vblinear_eval_sampled(x, mu_w, logsig2_w, bias, random_state, *,
                          mxu_dtype=jnp.float32, tb=256, tn=256, tk=512):
    """Eval sampled-mode forward with the weight sample fused per K-tile."""
    B, n_in = x.shape
    n_out = mu_w.shape[0]
    tb, tn, tk, Bp, n_in_p, n_out_p = _choose_tiles(B, n_in, n_out, tb, tn, tk)

    xp = _pad2(x, Bp, n_in_p)
    mu_wt = _pad2(mu_w.T, n_in_p, n_out_p)
    ls_t = _pad2(logsig2_w.T, n_in_p, n_out_p)
    rand_t = _pad2(random_state.T, n_in_p, n_out_p)
    bias_p = _pad2(bias.reshape(1, -1), 1, n_out_p)

    grid = (Bp // tb, n_out_p // tn, n_in_p // tk)
    out = pl.pallas_call(
        functools.partial(_sampled_kernel, mxu_dtype=mxu_dtype),
        out_shape=jax.ShapeDtypeStruct((Bp, n_out_p), x.dtype),
        grid_spec=pltpu.PrefetchScalarGridSpec(
            num_scalar_prefetch=0,
            grid=grid,
            in_specs=[
                pl.BlockSpec((tb, tk), lambda i, j, k: (i, k)),   # x
                pl.BlockSpec((tk, tn), lambda i, j, k: (k, j)),   # mu_w.T
                pl.BlockSpec((tk, tn), lambda i, j, k: (k, j)),   # logsig2.T
                pl.BlockSpec((tk, tn), lambda i, j, k: (k, j)),   # random.T
                pl.BlockSpec((1, tn), lambda i, j, k: (0, j)),    # bias
            ],
            out_specs=pl.BlockSpec((tb, tn), lambda i, j, k: (i, j)),
            scratch_shapes=[pltpu.VMEM((tb, tn), jnp.float32)],
        ),
        compiler_params=_COMPILER_PARAMS,
    )(xp, mu_wt, ls_t, rand_t, bias_p)
    return out[:B, :n_out]


# ----------------------------------------------------------------------------
# Pure-JAX references (for correctness checks)
# ----------------------------------------------------------------------------
def _ref_train(x, mu_w, logsig2_w, bias, eps):
    mu_out = x @ mu_w.T + bias
    var_out = (x * x) @ jnp.exp(logsig2_w).T + 1e-8
    return mu_out + jnp.sqrt(var_out) * eps


def _ref_map(x, mu_w, bias):
    return x @ mu_w.T + bias


def _ref_sampled(x, mu_w, logsig2_w, bias, random_state):
    w = mu_w + jnp.sqrt(jnp.exp(logsig2_w)) * random_state
    return x @ w.T + bias + 1e-8


if __name__ == "__main__":
    # Shapes consistent with the module: VBLinear(in_features=32, out_features=16),
    # batch of 8 inputs.
    B, n_in, n_out = 8, 32, 16
    std_init = -9.0

    key = jax.random.PRNGKey(0)
    k_x, k_mu, k_ls, k_eps, k_rand = jax.random.split(key, 5)

    # Deterministic parameter init mirroring reset_parameters():
    stdv = 1.0 / math.sqrt(n_in)
    mu_w = stdv * jax.random.normal(k_mu, (n_out, n_in), jnp.float32)
    logsig2_w = std_init + 0.001 * jax.random.normal(k_ls, (n_out, n_in), jnp.float32)
    bias = jnp.zeros((n_out,), jnp.float32)

    x = jax.random.normal(k_x, (B, n_in), jnp.float32)
    eps = jax.random.normal(k_eps, (B, n_out), jnp.float32)               # randn_like(mu_out)
    random_state = jax.random.normal(k_rand, (n_out, n_in), jnp.float32)  # randn_like(logsig2_w)

    # Training-mode forward (two fused matmuls with K-reduction accumulators).
    out_train = jax.block_until_ready(vblinear_train(x, mu_w, logsig2_w, bias, eps))
    ref_train = _ref_train(x, mu_w, logsig2_w, bias, eps)

    # Eval MAP mode (streams only x, mu_w, bias).
    out_map = jax.block_until_ready(vblinear_eval_map(x, mu_w, bias))
    ref_map = _ref_map(x, mu_w, bias)

    # Eval sampled mode (weight sample fused per K-tile).
    out_samp = jax.block_until_ready(
        vblinear_eval_sampled(x, mu_w, logsig2_w, bias, random_state))
    ref_samp = _ref_sampled(x, mu_w, logsig2_w, bias, random_state)

    assert jnp.allclose(out_train, ref_train, atol=1e-5, rtol=1e-5)
    assert jnp.allclose(out_map, ref_map, atol=1e-5, rtol=1e-5)
    assert jnp.allclose(out_samp, ref_samp, atol=1e-5, rtol=1e-5)

    # Also exercise the bf16-MXU path (recommended on v6e/v7x); looser tolerance.
    out_train_bf16 = jax.block_until_ready(
        vblinear_train(x, mu_w, logsig2_w, bias, eps, mxu_dtype=jnp.bfloat16))
    assert jnp.allclose(out_train_bf16, ref_train, atol=5e-2, rtol=5e-2)

    print("KERNEL_OK")
</pallas_src>

<mosaic_0001>
module attributes {stable_mosaic.version = 11 : i64} {
  func.func @_train_kernel(%arg0: i32, %arg1: i32, %arg2: i32, %arg3: memref<8x128xf32, #tpu.memory_space<vmem>>, %arg4: memref<128x128xf32, #tpu.memory_space<vmem>>, %arg5: memref<128x128xf32, #tpu.memory_space<vmem>>, %arg6: memref<1x128xf32, #tpu.memory_space<vmem>>, %arg7: memref<8x128xf32, #tpu.memory_space<vmem>>, %arg8: memref<8x128xf32, #tpu.memory_space<vmem>>, %arg9: memref<8x128xf32, #tpu.memory_space<vmem>>, %arg10: memref<8x128xf32, #tpu.memory_space<vmem>>) attributes {dimension_semantics = [#tpu.dimension_semantics<parallel>, #tpu.dimension_semantics<parallel>, #tpu.dimension_semantics<arbitrary>], iteration_bounds = array<i64: 1, 1, 1>, scalar_prefetch = 0 : i64, scratch_operands = 2 : i64, tpu.core_type = #tpu.core_type<tc>, window_params = [{transform_indices = @transform_0, window_bounds = array<i64: 8, 128>}, {transform_indices = @transform_1, window_bounds = array<i64: 128, 128>}, {transform_indices = @transform_2, window_bounds = array<i64: 128, 128>}, {transform_indices = @transform_3, window_bounds = array<i64: 1, 128>}, {transform_indices = @transform_4, window_bounds = array<i64: 8, 128>}, {transform_indices = @transform_5, window_bounds = array<i64: 8, 128>}]} {
    %c0_i32 = arith.constant 0 : i32
    %0 = arith.cmpi eq, %arg2, %c0_i32 : i32
    %1 = arith.extui %0 : i1 to i32
    %c0_i32_0 = arith.constant 0 : i32
    %2 = arith.cmpi ne, %1, %c0_i32_0 : i32
    scf.if %2 {
      %cst_17 = arith.constant 0.000000e+00 : f32
      %19 = vector.broadcast %cst_17 : f32 to vector<8x128xf32>
      %c0_18 = arith.constant 0 : index
      %c0_19 = arith.constant 0 : index
      %20 = vector.load %arg9[%c0_18, %c0_19] : memref<8x128xf32, #tpu.memory_space<vmem>>, vector<8x128xf32>
      tpu.vector_store %arg9[%c0_18, %c0_19], %19 {strides = array<i32>} : memref<8x128xf32, #tpu.memory_space<vmem>>, vector<8x128xf32>,
      %cst_20 = arith.constant 0.000000e+00 : f32
      %21 = vector.broadcast %cst_20 : f32 to vector<8x128xf32>
      %c0_21 = arith.constant 0 : index
      %c0_22 = arith.constant 0 : index
      %22 = vector.load %arg10[%c0_21, %c0_22] : memref<8x128xf32, #tpu.memory_space<vmem>>, vector<8x128xf32>
      tpu.vector_store %arg10[%c0_21, %c0_22], %21 {strides = array<i32>} : memref<8x128xf32, #tpu.memory_space<vmem>>, vector<8x128xf32>,
    } else {
    }
    %c0 = arith.constant 0 : index
    %c0_1 = arith.constant 0 : index
    %3 = vector.load %arg3[%c0, %c0_1] : memref<8x128xf32, #tpu.memory_space<vmem>>, vector<8x128xf32>
    %c0_2 = arith.constant 0 : index
    %c0_3 = arith.constant 0 : index
    %4 = vector.load %arg4[%c0_2, %c0_3] : memref<128x128xf32, #tpu.memory_space<vmem>>, vector<128x128xf32>
    %c0_4 = arith.constant 0 : index
    %c0_5 = arith.constant 0 : index
    %5 = vector.load %arg5[%c0_4, %c0_5] : memref<128x128xf32, #tpu.memory_space<vmem>>, vector<128x128xf32>
    %6 = math.exp %5 : vector<128x128xf32>
    %c0_6 = arith.constant 0 : index
    %c0_7 = arith.constant 0 : index
    %7 = vector.load %arg9[%c0_6, %c0_7] : memref<8x128xf32, #tpu.memory_space<vmem>>, vector<8x128xf32>
    %cst = arith.constant dense<0.000000e+00> : vector<8x128xf32>
    %8 = tpu.matmul %3, %4, %cst {dimension_numbers = #tpu.dot_dimension_numbers<[1], [0], [0], [1], [0, 0, 1, 1], [], []>} : vector<8x128xf32>, vector<128x128xf32>, vector<8x128xf32> -> vector<8x128xf32>
    %9 = arith.addf %7, %8 : vector<8x128xf32>
    %c0_8 = arith.constant 0 : index
    %c0_9 = arith.constant 0 : index
    %10 = vector.load %arg9[%c0_8, %c0_9] : memref<8x128xf32, #tpu.memory_space<vmem>>, vector<8x128xf32>
    tpu.vector_store %arg9[%c0_8, %c0_9], %9 {strides = array<i32>} : memref<8x128xf32, #tpu.memory_space<vmem>>, vector<8x128xf32>,
    %c0_10 = arith.constant 0 : index
    %c0_11 = arith.constant 0 : index
    %11 = vector.load %arg10[%c0_10, %c0_11] : memref<8x128xf32, #tpu.memory_space<vmem>>, vector<8x128xf32>
    %12 = arith.mulf %3, %3 : vector<8x128xf32>
    %cst_12 = arith.constant dense<0.000000e+00> : vector<8x128xf32>
    %13 = tpu.matmul %12, %6, %cst_12 {dimension_numbers = #tpu.dot_dimension_numbers<[1], [0], [0], [1], [0, 0, 1, 1], [], []>} : vector<8x128xf32>, vector<128x128xf32>, vector<8x128xf32> -> vector<8x128xf32>
    %14 = arith.addf %11, %13 : vector<8x128xf32>
    %c0_13 = arith.constant 0 : index
    %c0_14 = arith.constant 0 : index
    %15 = vector.load %arg10[%c0_13, %c0_14] : memref<8x128xf32, #tpu.memory_space<vmem>>, vector<8x128xf32>
    tpu.vector_store %arg10[%c0_13, %c0_14], %14 {strides = array<i32>} : memref<8x128xf32, #tpu.memory_space<vmem>>, vector<8x128xf32>,
    %c0_i32_15 = arith.constant 0 : i32
    %16 = arith.cmpi eq, %arg2, %c0_i32_15 : i32
    %17 = arith.extui %16 : i1 to i32
    %c0_i32_16 = arith.constant 0 : i32
    %18 = arith.cmpi ne, %17, %c0_i32_16 : i32
    scf.if %18 {
      %c0_17 = arith.constant 0 : index
      %c0_18 = arith.constant 0 : index
      %19 = vector.load %arg6[%c0_17, %c0_18] : memref<1x128xf32, #tpu.memory_space<vmem>>, vector<1x128xf32>
      %c0_19 = arith.constant 0 : index
      %c0_20 = arith.constant 0 : index
      %20 = vector.load %arg7[%c0_19, %c0_20] : memref<8x128xf32, #tpu.memory_space<vmem>>, vector<8x128xf32>
      %c0_21 = arith.constant 0 : index
      %c0_22 = arith.constant 0 : index
      %21 = vector.load %arg9[%c0_21, %c0_22] : memref<8x128xf32, #tpu.memory_space<vmem>>, vector<8x128xf32>
      %22 = vector.broadcast %19 : vector<1x128xf32> to vector<8x128xf32>
      %23 = arith.addf %21, %22 : vector<8x128xf32>
      %c0_23 = arith.constant 0 : index
      %c0_24 = arith.constant 0 : index
      %24 = vector.load %arg10[%c0_23, %c0_24] : memref<8x128xf32, #tpu.memory_space<vmem>>, vector<8x128xf32>
      %cst_25 = arith.constant 9.99999993E-9 : f32
      %25 = vector.broadcast %cst_25 : f32 to vector<8x128xf32>
      %26 = arith.addf %24, %25 : vector<8x128xf32>
      %27 = math.sqrt %26 : vector<8x128xf32>
      %28 = arith.mulf %27, %20 : vector<8x128xf32>
      %29 = arith.addf %23, %28 : vector<8x128xf32>
      %c0_26 = arith.constant 0 : index
      %c0_27 = arith.constant 0 : index
      %30 = vector.load %arg8[%c0_26, %c0_27] : memref<8x128xf32, #tpu.memory_space<vmem>>, vector<8x128xf32>
      tpu.vector_store %arg8[%c0_26, %c0_27], %29 {strides = array<i32>} : memref<8x128xf32, #tpu.memory_space<vmem>>, vector<8x128xf32>,
    } else {
    }
    return
  }
  func.func @transform_0(%arg0: i32, %arg1: i32, %arg2: i32) -> (i32, i32) {
    %c0_i32 = arith.constant 0 : i32
    return %arg0, %arg2 : i32, i32
  }
  func.func @transform_1(%arg0: i32, %arg1: i32, %arg2: i32) -> (i32, i32) {
    %c0_i32 = arith.constant 0 : i32
    return %arg2, %arg1 : i32, i32
  }
  func.func @transform_2(%arg0: i32, %arg1: i32, %arg2: i32) -> (i32, i32) {
    %c0_i32 = arith.constant 0 : i32
    return %arg2, %arg1 : i32, i32
  }
  func.func @transform_3(%arg0: i32, %arg1: i32, %arg2: i32) -> (i32, i32) {
    %c0_i32 = arith.constant 0 : i32
    %c0_i32_0 = arith.constant 0 : i32
    return %c0_i32, %arg1 : i32, i32
  }
  func.func @transform_4(%arg0: i32, %arg1: i32, %arg2: i32) -> (i32, i32) {
    %c0_i32 = arith.constant 0 : i32
    return %arg0, %arg1 : i32, i32
  }
  func.func @transform_5(%arg0: i32, %arg1: i32, %arg2: i32) -> (i32, i32) {
    %c0_i32 = arith.constant 0 : i32
    return %arg0, %arg1 : i32, i32
  }
}

</mosaic_0001>

<bundles_post_ra>
// kernel: tpu_custom_call.1
= control target key start
LH: loop header
LB: loop body
LE: loop exit
PB: predicated region body
PF: predicated region fallthrough
CT: control target
= control target key end

     0   :  { %10 = vsyncpa [#allocation5], 0  ;;  %s469_s0 = inlined_call_operand.hbm [shape: f32[8,128], index: 0, kind: input, shape index: {}]   ;;  %s470_s1 = inlined_call_operand.hbm [shape: f32[128,128], index: 1, kind: input, shape index: {}]   ;;  %s471_s2 = inlined_call_operand.hbm [shape: f32[128,128], index: 2, kind: input, shape index: {}]   ;;  %s472_s3 = inlined_call_operand.vmem [shape: f32[1,128], index: 3, kind: input, shape index: {}]   ;;  %s473_s4 = inlined_call_operand.hbm [shape: f32[8,128], index: 4, kind: input, shape index: {}]   ;;  %s474_s5 = inlined_call_operand.hbm [shape: f32[8,128], index: 5, kind: output, shape index: {}]  }
   0x1   :  { %11 = vsyncpa [#allocation8], 0 }
   0x2   :  { %12 = vsyncpa [#allocation11], 0  ;;  %s29_s20 = sshll.u32 %s470_s1, 4  ;;  %s30_s20 = int_to_ptr.hbm [resolvable:$true] %s29_s20 }
   0x3   :  { %13 = vsyncpa [#allocation6], 0  ;;  %s414_s21 = smov [#allocation7]   ;;  %s19_s25 = sshll.u32 %s469_s0, 4  ;;  %s20_s25 = int_to_ptr.hbm [resolvable:$true] %s19_s25 }
   0x4   :  { %s31_s22 = sshll.u32 %s414_s21, 4  ;;  %s415_s26 = smov 128   ;;  %s32_s22 = int_to_ptr.vmem [resolvable:$true] %s31_s22 }
   0x5   :  { %s416_s27 = smov 8   ;;  %s417_s28 = smov [#allocation4]  }
   0x6   :  { %37 = dma.hbm_to_vmem [thread:$0]  %s30_s20, 2048, %s32_s22, [#allocation8], %s415_s26, %s415_s26, %s416_s27  }
   0x7   :  { %s21_s29 = sshll.u32 %s417_s28, 4  ;;  %s42_s7 = sshll.u32 %s471_s2, 4  ;;  %s22_s29 = int_to_ptr.vmem [resolvable:$true] %s21_s29  ;;  %s43_s7 = int_to_ptr.hbm [resolvable:$true] %s42_s7 }
   0x8   :  { %24 = dma.hbm_to_vmem [thread:$0]  %s20_s25, 128, %s22_s29, [#allocation5]  }
   0x9   :  { %s58_s9 = sshll.u32 %s473_s4, 4  ;;  %s418_s10 = smov [#allocation9]   ;;  %s59_s9 = int_to_ptr.hbm [resolvable:$true] %s58_s9 }
   0xa   :  { %s44_s11 = sshll.u32 %s418_s10, 4  ;;  %s419_s0 = smov [#allocation10]   ;;  %s45_s11 = int_to_ptr.vmem [resolvable:$true] %s44_s11 }
   0xb   :  { %50 = dma.hbm_to_vmem [thread:$0]  %s43_s7, 2048, %s45_s11, [#allocation8], %s415_s26, %s415_s26, %s416_s27  }
   0xc   :  { %s60_s12 = sshll.u32 %s419_s0, 4  ;;  %s61_s12 = int_to_ptr.vmem [resolvable:$true] %s60_s12 }
   0xd   :  { %63 = dma.hbm_to_vmem [thread:$0]  %s59_s9, 128, %s61_s12, [#allocation11]  }
   0xe   :  { %406 = dma.done.wait [#allocation5], 128  }
   0xf   :  { %407 = vsyncadd [#allocation5], 4294967168 }
  0x10   :  { %408 = dma.done.wait [#allocation8], 4096  }
  0x11   :  { %409 = vsyncadd [#allocation8], 4294963200 }
  0x12   :  { %410 = dma.done.wait [#allocation11], 128  }
  0x13   :  { %411 = vsyncadd [#allocation11], 4294967168  ;;  %v118_v0 = vld [vmem:[#allocation9 + $0x78] sm:$0xff]  ;;  %v117_v1 = vld [vmem:[#allocation9 + $0x70] sm:$0xff]  ;;  %s420_s13 = smov [#allocation12]   ;;  %s232_s17 = sshll.u32 %s474_s5, 4  ;;  %s233_s17 = int_to_ptr.hbm [resolvable:$true] %s232_s17 }
  0x14   :  { %v116_v2 = vld [vmem:[#allocation9 + $0x68] sm:$0xff]  ;;  %v149_v3 = vmul.f32 1.442695, %v118_v0  ;;  %v147_v4 = vmul.f32 1.442695, %v117_v1  ;;  %v115_v6 = vld [vmem:[#allocation9 + $0x60] sm:$0xff] }
  0x15   :  { %v145_v5 = vmul.f32 1.442695, %v116_v2  ;;  %v114_v7 = vld [vmem:[#allocation9 + $0x58] sm:$0xff]  ;;  %v143_v8 = vmul.f32 1.442695, %v115_v6  ;;  %v113_v9 = vld [vmem:[#allocation9 + $0x50] sm:$0xff] }
  0x16   :  { %252 = vpow2.f32 %v149_v3  ;;  %v141_v10 = vmul.f32 1.442695, %v114_v7  ;;  %v112_v11 = vld [vmem:[#allocation9 + $0x48] sm:$0xff]  ;;  %v139_v12 = vmul.f32 1.442695, %v113_v9  ;;  %v111_v13 = vld [vmem:[#allocation9 + $0x40] sm:$0xff] }
  0x17   :  { %254 = vpow2.f32 %v147_v4  ;;  %v102_v14 = vld [vmem:[#allocation7 + $0x78] sm:$0xff]  ;;  %v101_v15 = vld [vmem:[#allocation7 + $0x70] sm:$0xff]  ;;  %v137_v17 = vmul.f32 1.442695, %v112_v11  ;;  %v100_v20 = vld [vmem:[#allocation7 + $0x68] sm:$0xff]  ;;  %s230_s14 = sshll.u32 %s420_s13, 4  ;;  %s231_s14 = int_to_ptr.vmem [resolvable:$true] %s230_s14 }
  0x18   :  { %256 = vpow2.f32 %v145_v5  ;;  %152 = vmatpush.msra.mxu0 %v102_v14  ;;  %v110_v19 = vld [vmem:[#allocation9 + $0x38] sm:$0xff]  ;;  %v135_v22 = vmul.f32 1.442695, %v111_v13  ;;  %v109_v23 = vld [vmem:[#allocation9 + $0x30] sm:$0xff]  ;;  %v99_v24 = vld [vmem:[#allocation7 + $0x60] sm:$0xff] }
  0x19   :  { %258 = vpow2.f32 %v143_v8  ;;  %v133_v26 = vmul.f32 1.442695, %v110_v19  ;;  %v108_v27 = vld [vmem:[#allocation9 + $0x28] sm:$0xff]  ;;  %v98_v28 = vld [vmem:[#allocation7 + $0x58] sm:$0xff]  ;;  %v131_v30 = vmul.f32 1.442695, %v109_v23 }
  0x1a   :  { %260 = vpow2.f32 %v141_v10  ;;  %153 = vmatpush.msra.mxu0 %v101_v15  ;;  %v107_v31 = vld [vmem:[#allocation9 + $0x20] sm:$0xff]  ;;  %v97_v32 = vld [vmem:[#allocation7 + $0x50] sm:$0xff]  ;;  %v129_v34 = vmul.f32 1.442695, %v108_v27  ;;  %v106_v35 = vld [vmem:[#allocation9 + $0x18] sm:$0xff] }
  0x1b   :  { %262 = vpow2.f32 %v139_v12  ;;  %v96_v36 = vld [vmem:[#allocation7 + $0x48] sm:$0xff]  ;;  %v127_v38 = vmul.f32 1.442695, %v107_v31  ;;  %v105_v39 = vld [vmem:[#allocation9 + $0x10] sm:$0xff]  ;;  %v95_v40 = vld [vmem:[#allocation7 + $0x40] sm:$0xff] }
  0x1c   :  { %v253_v16 = vpop.eup %252  ;;  %264 = vpow2.f32 %v137_v17  ;;  %154 = vmatpush.msra.mxu0 %v100_v20  ;;  %v125_v42 = vmul.f32 1.442695, %v106_v35  ;;  %v104_v43 = vld [vmem:[#allocation9 + $0x8] sm:$0xff]  ;;  %v94_v44 = vld [vmem:[#allocation7 + $0x38] sm:$0xff]  ;;  %v123_v46 = vmul.f32 1.442695, %v105_v39 }
  0x1d   :  { %v255_v18 = vpop.eup %254  ;;  %176 = vmatpush.msra.mxu1 %v253_v16  ;;  %266 = vpow2.f32 %v135_v22  ;;  %v103_v47 = vld [vmem:[#allocation9] sm:$0xff]  ;;  %v93_v48 = vld [vmem:[#allocation7 + $0x30] sm:$0xff]  ;;  %v121_v50 = vmul.f32 1.442695, %v104_v43  ;;  %v92_v51 = vld [vmem:[#allocation7 + $0x28] sm:$0xff] }
  0x1e   :  { %v257_v21 = vpop.eup %256  ;;  %155 = vmatpush.msra.mxu0 %v99_v24  ;;  %268 = vpow2.f32 %v133_v26  ;;  %v119_v53 = vmul.f32 1.442695, %v103_v47  ;;  %v91_v54 = vld [vmem:[#allocation7 + $0x20] sm:$0xff]  ;;  %v90_v56 = vld [vmem:[#allocation7 + $0x18] sm:$0xff]  ;;  %v89_v58 = vld [vmem:[#allocation7 + $0x10] sm:$0xff] }
  0x1f   :  { %177 = vmatpush.msra.mxu1 %v255_v18  ;;  %v259_v25 = vpop.eup %258  ;;  %270 = vpow2.f32 %v131_v30  ;;  %v86_v60 = vld [vmem:[#allocation4] sm:$0xff]  ;;  %v88_v61 = vld [vmem:[#allocation7 + $0x8] sm:$0xff]  ;;  %v87_v63 = vld [vmem:[#allocation7] sm:$0xff] }
  0x20   :  { %v261_v29 = vpop.eup %260  ;;  %156 = vmatpush.msra.mxu0 %v98_v28  ;;  %272 = vpow2.f32 %v129_v34  ;;  %v175_v1 = vmul.f32 %v86_v60, %v86_v60  ;;  %v251_v9 = vld [vmem:[%s472_s3] ss:$0 sm:$0xff]  ;;  %v202_v13 = vld [vmem:[#allocation10] sm:$0xff] }
  0x21   :  { %178 = vmatpush.msra.mxu1 %v257_v21  ;;  %v263_v33 = vpop.eup %262  ;;  %274 = vpow2.f32 %v127_v38 }
  0x22   :  { %v265_v37 = vpop.eup %264  ;;  %157 = vmatpush.msra.mxu0 %v97_v32  ;;  %276 = vpow2.f32 %v125_v42 }
  0x23   :  { %179 = vmatpush.msra.mxu1 %v259_v25  ;;  %v267_v41 = vpop.eup %266  ;;  %278 = vpow2.f32 %v123_v46 }
  0x24   :  { %158 = vmatpush.msra.mxu0 %v96_v36  ;;  %v269_v45 = vpop.eup %268  ;;  %280 = vpow2.f32 %v121_v50 }
  0x25   :  { %180 = vmatpush.msra.mxu1 %v261_v29  ;;  %v271_v49 = vpop.eup %270  ;;  %282 = vpow2.f32 %v119_v53 }
  0x26   :  { %159 = vmatpush.msra.mxu0 %v95_v40  ;;  %v273_v52 = vpop.eup %272 }
  0x27   :  { %181 = vmatpush.msra.mxu1 %v263_v33  ;;  %v275_v55 = vpop.eup %274 }
  0x28   :  { %160 = vmatpush.msra.mxu0 %v94_v44  ;;  %v277_v57 = vpop.eup %276 }
  0x29   :  { %182 = vmatpush.msra.mxu1 %v265_v37  ;;  %v279_v59 = vpop.eup %278 }
  0x2a   :  { %161 = vmatpush.msra.mxu0 %v93_v48  ;;  %v281_v62 = vpop.eup %280 }
  0x2b   :  { %183 = vmatpush.msra.mxu1 %v267_v41  ;;  %v283_v0 = vpop.eup %282 }
  0x2c   :  { %162 = vmatpush.msra.mxu0 %v92_v51 }
  0x2d   :  { %184 = vmatpush.msra.mxu1 %v269_v45 }
  0x2e   :  { %163 = vmatpush.msra.mxu0 %v91_v54 }
  0x2f   :  { %185 = vmatpush.msra.mxu1 %v271_v49 }
  0x30   :  { %164 = vmatpush.msra.mxu0 %v90_v56 }
  0x31   :  { %186 = vmatpush.msra.mxu1 %v273_v52 }
  0x32   :  { %165 = vmatpush.msra.mxu0 %v89_v58 }
  0x33   :  { %187 = vmatpush.msra.mxu1 %v275_v55 }
  0x34   :  { %166 = vmatpush.msra.mxu0 %v88_v61 }
  0x35   :  { %188 = vmatpush.msra.mxu1 %v277_v57 }
  0x36   :  { %167 = vmatpush.msra.mxu0 %v87_v63 }
  0x37   :  { %189 = vmatpush.msra.mxu1 %v279_v59  ;;  %168 = vmatmul.f32.vlgmr.msra.gmra.mxu0 %v86_v60 }
  0x39   :  { %190 = vmatpush.msra.mxu1 %v281_v62 }
  0x3b   :  { %191 = vmatpush.msra.mxu1 %v283_v0 }
  0x3c   :  { %192 = vmatmul.f32.vlgmr.msra.gmra.mxu1 %v175_v1 }
  0xb4   :  { %v169_v11 = vpop.f32.mrf.mxu0 }
  0xb5   :  { %v207_v15 = vadd.f32 %v251_v9, %v169_v11 }
  0xb9   :  { %v193_v2 = vpop.f32.mrf.mxu1 }
  0xba   :  { %v209_v3 = vadd.f32 1e-08, %v193_v2 }
  0xbc   :  { %284 = vrsqrt.f32 %v209_v3  ;;  %vm217_vm0 = vcmp.eq.f32.partialorder %v209_v3, inf  ;;  %v220_v14 = vand.u32 2147483648, %v209_v3  ;;  %vm219_vm1 = vcmp.eq.f32.partialorder %v209_v3, 0.0 }
  0xc2   :  { %v285_v4 = vpop.eup %284 }
  0xc3   :  { %v211_v5 = vmul.f32 %v285_v4, %v209_v3 }
  0xc5   :  { %v212_v6 = vmul.f32 %v285_v4, %v211_v5 }
  0xc7   :  { %v213_v7 = vmul.f32 0.5, %v212_v6 }
  0xc9   :  { %v214_v8 = vsub.f32 1.5, %v213_v7 }
  0xcb   :  { %v215_v10 = vmul.f32 %v285_v4, %v214_v8 }
  0xcd   :  { %v216_v12 = vmul.f32 %v215_v10, %v209_v3 }
  0xcf   :  { %v218_v16 = vsel %vm217_vm0, %v209_v3, %v216_v12 }
  0xd0   :  { %v221_v17 = vsel %vm219_vm1, %v220_v14, %v218_v16 }
  0xd1   :  { %v222_v18 = vmul.f32 %v221_v17, %v202_v13 }
  0xd3   :  { %v223_v19 = vadd.f32 %v222_v18, %v207_v15 }
  0xd5   :  { %224 = vst [vmem:[#allocation12] sm:$0xff] %v223_v19 }
  0xd6   :  { %235 = dma.vmem_to_hbm [thread:$0]  %s231_s14, 128, %s233_s17, [#allocation6]  }
  0xd7   :  { %412 = dma.done.wait [#allocation6], 128  }
  0xd8   :  { %413 = vsyncadd [#allocation6], 4294967168 }
  0xd9   :  { %240 = vsyncpa [#allocation5], 1 }
  0xda   :  { %241 = vsyncpa [#allocation8], 1 }
  0xdb   :  { %242 = vsyncpa [#allocation11], 1 }
  0xdc   :  { %243 = vsyncpa [#allocation6], 1 }

</bundles_post_ra>
